<compile_context>
chip_gen: v5e
topology: v5e:2x2
jax: 0.10.0
libtpu: 0.0.40
codegen_flags: <defaults>
</compile_context>

<pallas_src>
import jax
import jax.numpy as jnp
from jax.experimental import pallas as pl
from jax.experimental.pallas import tpu as pltpu

_LANE = 128
_SUBLANE = 8


def _round_up(x, m):
    return ((x + m - 1) // m) * m


# ----------------------------------------------------------------------------
# Pallas kernel: fused classification head (concat + linear1 + ReLU + linear2)
# ----------------------------------------------------------------------------
def _mlp_head_kernel(xt_ref, xv_ref, xa_ref,
                     w1t_ref, w1v_ref, w1a_ref, b1_ref,
                     w2_ref, b2_ref, out_ref):
    # Fused concat: [xt | xv | xa] @ W1  ==  xt@W1t + xv@W1v + xa@W1a, accumulated f32.
    h = jnp.dot(xt_ref[...], w1t_ref[...], preferred_element_type=jnp.float32)
    h += jnp.dot(xv_ref[...], w1v_ref[...], preferred_element_type=jnp.float32)
    h += jnp.dot(xa_ref[...], w1a_ref[...], preferred_element_type=jnp.float32)
    h = jnp.maximum(h + b1_ref[...], 0.0)            # bias + ReLU in f32 (no bf16 VPU on v5e)
    # TODO(synk): nn.Dropout() is identity in eval mode; train-mode dropout would use
    # pltpu.prng_seed / pltpu.prng_random_bits here.
    logits = jnp.dot(h.astype(w2_ref.dtype), w2_ref[...],
                     preferred_element_type=jnp.float32)
    out_ref[...] = (logits + b2_ref[...]).astype(out_ref.dtype)


def mlp_head(text_feat, video_feat, audio_feat, w1, b1, w2, b2,
             *, tile_b=128, compute_dtype=jnp.bfloat16):
    """logits = ReLU(concat(xt,xv,xa) @ W1 + b1) @ W2 + b2, fused on TPU."""
    B = text_feat.shape[0]
    dt, dv, da = text_feat.shape[1], video_feat.shape[1], audio_feat.shape[1]
    D = dt + dv + da
    assert w1.shape[0] == D
    H, L = w1.shape[1], w2.shape[1]

    # Lane-dense padding of hidden / label dims (zero padding => numerically identical).
    H_pad = _round_up(H, _LANE)
    L_pad = _round_up(L, _LANE)

    # Batch tile: multiple of the sublane width; shrink for tiny batches.
    TB = _round_up(min(tile_b, _round_up(B, _SUBLANE)), _SUBLANE)
    B_pad = _round_up(B, TB)

    f32 = jnp.float32

    def pad2(a, rows, cols):
        return jnp.pad(a, ((0, rows - a.shape[0]), (0, cols - a.shape[1])))

    # Activations: bf16 for the MXU + halved DMA bytes.
    xt = pad2(text_feat.astype(compute_dtype), B_pad, dt)
    xv = pad2(video_feat.astype(compute_dtype), B_pad, dv)
    xa = pad2(audio_feat.astype(compute_dtype), B_pad, da)

    # Split W1 row-wise so the (B, D) concat never hits HBM.
    w1t = pad2(w1[:dt].astype(compute_dtype), dt, H_pad)
    w1v = pad2(w1[dt:dt + dv].astype(compute_dtype), dv, H_pad)
    w1a = pad2(w1[dt + dv:].astype(compute_dtype), da, H_pad)
    b1p = pad2(b1.reshape(1, H).astype(f32), 1, H_pad)
    w2p = pad2(w2.astype(compute_dtype), H_pad, L_pad)
    b2p = pad2(b2.reshape(1, L).astype(f32), 1, L_pad)

    grid = (B_pad // TB,)

    def x_spec(d):
        return pl.BlockSpec((TB, d), lambda i: (i, 0))

    def resident(shape):  # constant index_map -> weights stay VMEM-resident
        return pl.BlockSpec(shape, lambda i: (0, 0))

    # Advisory cost estimate so XLA can schedule the head under encoder compute.
    itemsize = jnp.dtype(compute_dtype).itemsize
    flops = 2 * B_pad * (D * H_pad + H_pad * L_pad)
    bytes_accessed = ((xt.size + xv.size + xa.size
                       + w1t.size + w1v.size + w1a.size + w2p.size) * itemsize
                      + (b1p.size + b2p.size) * 4 + B_pad * L_pad * 4)
    cost = pl.CostEstimate(flops=flops, transcendentals=0,
                           bytes_accessed=bytes_accessed)

    # VMEM budget: resident weights + double-buffered activation/output tiles,
    # with margin; clamp to 32 MiB so the same setting fits v5e/v6e/v7x.
    weight_bytes = ((w1t.size + w1v.size + w1a.size + w2p.size) * itemsize
                    + (b1p.size + b2p.size) * 4)
    act_bytes = 2 * (TB * D * itemsize + TB * L_pad * 4)
    vmem_limit = int(min(max(2 * weight_bytes + act_bytes + (2 << 20), 4 << 20),
                         32 << 20))

    out = pl.pallas_call(
        _mlp_head_kernel,
        out_shape=jax.ShapeDtypeStruct((B_pad, L_pad), f32),
        grid=grid,
        in_specs=[x_spec(dt), x_spec(dv), x_spec(da),
                  resident((dt, H_pad)), resident((dv, H_pad)), resident((da, H_pad)),
                  resident((1, H_pad)),
                  resident((H_pad, L_pad)), resident((1, L_pad))],
        out_specs=pl.BlockSpec((TB, L_pad), lambda i: (i, 0)),
        compiler_params=pltpu.CompilerParams(
            dimension_semantics=("parallel",),
            vmem_limit_bytes=vmem_limit),
        cost_estimate=cost,
    )(xt, xv, xa, w1t, w1v, w1a, b1p, w2p, b2p)

    return out[:B, :L]


# ----------------------------------------------------------------------------
# Stub backbone encoders (opaque sub-modules in the PyTorch model; plain-JAX glue).
# ----------------------------------------------------------------------------
def text_encoder(params, input_ids, attention_mask):
    # input_ids: (B, 1, S) int32 ; attention_mask: (B, 1, S)
    ids = jnp.squeeze(input_ids, axis=1)                      # .squeeze(1)
    mask = jnp.squeeze(attention_mask, axis=1).astype(jnp.float32)
    emb = params["embed"][ids]                                # (B, S, d_text)
    pooled = (emb * mask[..., None]).sum(axis=1) / jnp.maximum(
        mask.sum(axis=1, keepdims=True), 1.0)
    return pooled                                             # (B, d_text)


def video_encoder(params, pixel_values):
    # pixel_values: (B, 1, C, Hp, Wp)
    x = jnp.squeeze(pixel_values, axis=1)                     # .squeeze(1)
    x = x.reshape(x.shape[0], -1)
    return x @ params["proj"] + params["bias"]                # (B, d_video)


def audio_encoder(params, audio_feats):
    return audio_feats @ params["proj"] + params["bias"]      # (B, d_audio)


# ----------------------------------------------------------------------------
# Full forward matching MultimodalClassificationModel.forward
# ----------------------------------------------------------------------------
def multimodal_forward(params, batch, labels=None):
    text_last_hidden = text_encoder(
        params["text"], batch["text"]["input_ids"], batch["text"]["attention_mask"])
    video_last_hidden = video_encoder(params["video"], batch["video"]["pixel_values"])
    audio_last_hidden = audio_encoder(params["audio"], batch["audio"])

    # The concat is fused into the Pallas kernel (W1 split row-wise).
    logits = mlp_head(text_last_hidden, video_last_hidden, audio_last_hidden,
                      params["linear1"]["w"], params["linear1"]["b"],
                      params["linear2"]["w"], params["linear2"]["b"])

    loss = None
    if labels is not None:
        num_labels = logits.shape[-1]
        flat = logits.reshape(-1, num_labels)
        lse = jax.nn.logsumexp(flat, axis=-1)
        picked = jnp.take_along_axis(flat, labels.reshape(-1, 1), axis=-1)[:, 0]
        loss = jnp.mean(lse - picked)                         # CrossEntropyLoss (mean)
    return {"logits": logits, "loss": loss}


def mlp_head_reference(text_feat, video_feat, audio_feat, w1, b1, w2, b2):
    x = jnp.concatenate((text_feat, video_feat, audio_feat), axis=1)
    h = jnp.maximum(x @ w1 + b1, 0.0)
    return h @ w2 + b2


# ----------------------------------------------------------------------------
# Deterministic parameter init + small example run
# ----------------------------------------------------------------------------
def init_params(key, *, vocab=64, d_text=32, c=3, hp=8, wp=8,
                d_video=32, a_feat=16, d_audio=32, hidden=32, num_labels=4):
    ks = jax.random.split(key, 5)
    input_size = d_text + d_video + d_audio
    s = 0.02
    return {
        "text":  {"embed": s * jax.random.normal(ks[0], (vocab, d_text), jnp.float32)},
        "video": {"proj":  s * jax.random.normal(ks[1], (c * hp * wp, d_video), jnp.float32),
                  "bias":  jnp.zeros((d_video,), jnp.float32)},
        "audio": {"proj":  s * jax.random.normal(ks[2], (a_feat, d_audio), jnp.float32),
                  "bias":  jnp.zeros((d_audio,), jnp.float32)},
        "linear1": {"w": s * jax.random.normal(ks[3], (input_size, hidden), jnp.float32),
                    "b": jnp.zeros((hidden,), jnp.float32)},
        "linear2": {"w": s * jax.random.normal(ks[4], (hidden, num_labels), jnp.float32),
                    "b": jnp.zeros((num_labels,), jnp.float32)},
    }


if __name__ == "__main__":
    key = jax.random.PRNGKey(0)
    B, seq, vocab = 2, 8, 64
    c, hp, wp = 3, 8, 8
    a_feat, num_labels = 16, 4

    kp, k1, k2, k3, k4 = jax.random.split(key, 5)
    params = init_params(kp, vocab=vocab, c=c, hp=hp, wp=wp,
                         a_feat=a_feat, num_labels=num_labels)

    batch = {
        "text": {
            "input_ids": jax.random.randint(k1, (B, 1, seq), 0, vocab, jnp.int32),
            "attention_mask": jnp.ones((B, 1, seq), jnp.int32),
        },
        "video": {"pixel_values": jax.random.normal(k2, (B, 1, c, hp, wp), jnp.float32)},
        "audio": jax.random.normal(k3, (B, a_feat), jnp.float32),
    }
    labels = jax.random.randint(k4, (B,), 0, num_labels, jnp.int32)

    out = multimodal_forward(params, batch, labels=labels)
    jax.block_until_ready(out["logits"])
    jax.block_until_ready(out["loss"])
    assert out["logits"].shape == (B, num_labels)
    assert bool(jnp.isfinite(out["loss"]))

    # Cross-check the fused head against a plain-JAX f32 reference (bf16 MXU inputs,
    # f32 accumulation => small tolerance).
    tf = text_encoder(params["text"], batch["text"]["input_ids"],
                      batch["text"]["attention_mask"])
    vf = video_encoder(params["video"], batch["video"]["pixel_values"])
    af = audio_encoder(params["audio"], batch["audio"])
    ref = mlp_head_reference(tf, vf, af,
                             params["linear1"]["w"], params["linear1"]["b"],
                             params["linear2"]["w"], params["linear2"]["b"])
    assert bool(jnp.allclose(out["logits"], ref, rtol=5e-2, atol=5e-2))

    print("KERNEL_OK")
</pallas_src>

<mosaic_0001>
module attributes {stable_mosaic.version = 11 : i64} {
  func.func @_mlp_head_kernel(%arg0: i32, %arg1: memref<8x32xbf16, #tpu.memory_space<vmem>>, %arg2: memref<8x32xbf16, #tpu.memory_space<vmem>>, %arg3: memref<8x32xbf16, #tpu.memory_space<vmem>>, %arg4: memref<32x128xbf16, #tpu.memory_space<vmem>>, %arg5: memref<32x128xbf16, #tpu.memory_space<vmem>>, %arg6: memref<32x128xbf16, #tpu.memory_space<vmem>>, %arg7: memref<1x128xf32, #tpu.memory_space<vmem>>, %arg8: memref<128x128xbf16, #tpu.memory_space<vmem>>, %arg9: memref<1x128xf32, #tpu.memory_space<vmem>>, %arg10: memref<8x128xf32, #tpu.memory_space<vmem>>) attributes {dimension_semantics = [#tpu.dimension_semantics<parallel>], iteration_bounds = array<i64: 1>, scalar_prefetch = 0 : i64, scratch_operands = 0 : i64, tpu.core_type = #tpu.core_type<tc>, window_params = [{transform_indices = @transform_0, window_bounds = array<i64: 8, 32>}, {transform_indices = @transform_1, window_bounds = array<i64: 8, 32>}, {transform_indices = @transform_2, window_bounds = array<i64: 8, 32>}, {pipeline_mode = #tpu.pipeline_mode<synchronous>, transform_indices = @transform_3, window_bounds = array<i64: 32, 128>}, {pipeline_mode = #tpu.pipeline_mode<synchronous>, transform_indices = @transform_4, window_bounds = array<i64: 32, 128>}, {pipeline_mode = #tpu.pipeline_mode<synchronous>, transform_indices = @transform_5, window_bounds = array<i64: 32, 128>}, {pipeline_mode = #tpu.pipeline_mode<synchronous>, transform_indices = @transform_6, window_bounds = array<i64: 1, 128>}, {pipeline_mode = #tpu.pipeline_mode<synchronous>, transform_indices = @transform_7, window_bounds = array<i64: 128, 128>}, {pipeline_mode = #tpu.pipeline_mode<synchronous>, transform_indices = @transform_8, window_bounds = array<i64: 1, 128>}, {transform_indices = @transform_9, window_bounds = array<i64: 8, 128>}]} {
    %c0 = arith.constant 0 : index
    %c0_0 = arith.constant 0 : index
    %0 = vector.load %arg1[%c0, %c0_0] : memref<8x32xbf16, #tpu.memory_space<vmem>>, vector<8x32xbf16>
    %c0_1 = arith.constant 0 : index
    %c0_2 = arith.constant 0 : index
    %1 = vector.load %arg4[%c0_1, %c0_2] : memref<32x128xbf16, #tpu.memory_space<vmem>>, vector<32x128xbf16>
    %cst = arith.constant dense<0.000000e+00> : vector<8x128xf32>
    %2 = tpu.matmul %0, %1, %cst {dimension_numbers = #tpu.dot_dimension_numbers<[1], [0], [0], [1], [0, 0, 1, 1], [], []>} : vector<8x32xbf16>, vector<32x128xbf16>, vector<8x128xf32> -> vector<8x128xf32>
    %c0_3 = arith.constant 0 : index
    %c0_4 = arith.constant 0 : index
    %3 = vector.load %arg2[%c0_3, %c0_4] : memref<8x32xbf16, #tpu.memory_space<vmem>>, vector<8x32xbf16>
    %c0_5 = arith.constant 0 : index
    %c0_6 = arith.constant 0 : index
    %4 = vector.load %arg5[%c0_5, %c0_6] : memref<32x128xbf16, #tpu.memory_space<vmem>>, vector<32x128xbf16>
    %cst_7 = arith.constant dense<0.000000e+00> : vector<8x128xf32>
    %5 = tpu.matmul %3, %4, %cst_7 {dimension_numbers = #tpu.dot_dimension_numbers<[1], [0], [0], [1], [0, 0, 1, 1], [], []>} : vector<8x32xbf16>, vector<32x128xbf16>, vector<8x128xf32> -> vector<8x128xf32>
    %6 = arith.addf %2, %5 : vector<8x128xf32>
    %c0_8 = arith.constant 0 : index
    %c0_9 = arith.constant 0 : index
    %7 = vector.load %arg3[%c0_8, %c0_9] : memref<8x32xbf16, #tpu.memory_space<vmem>>, vector<8x32xbf16>
    %c0_10 = arith.constant 0 : index
    %c0_11 = arith.constant 0 : index
    %8 = vector.load %arg6[%c0_10, %c0_11] : memref<32x128xbf16, #tpu.memory_space<vmem>>, vector<32x128xbf16>
    %cst_12 = arith.constant dense<0.000000e+00> : vector<8x128xf32>
    %9 = tpu.matmul %7, %8, %cst_12 {dimension_numbers = #tpu.dot_dimension_numbers<[1], [0], [0], [1], [0, 0, 1, 1], [], []>} : vector<8x32xbf16>, vector<32x128xbf16>, vector<8x128xf32> -> vector<8x128xf32>
    %10 = arith.addf %6, %9 : vector<8x128xf32>
    %c0_13 = arith.constant 0 : index
    %c0_14 = arith.constant 0 : index
    %11 = vector.load %arg7[%c0_13, %c0_14] : memref<1x128xf32, #tpu.memory_space<vmem>>, vector<1x128xf32>
    %12 = vector.broadcast %11 : vector<1x128xf32> to vector<8x128xf32>
    %13 = arith.addf %10, %12 : vector<8x128xf32>
    %cst_15 = arith.constant 0.000000e+00 : f32
    %14 = vector.broadcast %cst_15 : f32 to vector<8x128xf32>
    %15 = arith.maximumf %13, %14 : vector<8x128xf32>
    %16 = arith.truncf %15 : vector<8x128xf32> to vector<8x128xbf16>
    %c0_16 = arith.constant 0 : index
    %c0_17 = arith.constant 0 : index
    %17 = vector.load %arg8[%c0_16, %c0_17] : memref<128x128xbf16, #tpu.memory_space<vmem>>, vector<128x128xbf16>
    %cst_18 = arith.constant dense<0.000000e+00> : vector<8x128xf32>
    %18 = tpu.matmul %16, %17, %cst_18 {dimension_numbers = #tpu.dot_dimension_numbers<[1], [0], [0], [1], [0, 0, 1, 1], [], []>} : vector<8x128xbf16>, vector<128x128xbf16>, vector<8x128xf32> -> vector<8x128xf32>
    %c0_19 = arith.constant 0 : index
    %c0_20 = arith.constant 0 : index
    %19 = vector.load %arg9[%c0_19, %c0_20] : memref<1x128xf32, #tpu.memory_space<vmem>>, vector<1x128xf32>
    %20 = vector.broadcast %19 : vector<1x128xf32> to vector<8x128xf32>
    %21 = arith.addf %18, %20 : vector<8x128xf32>
    %c0_21 = arith.constant 0 : index
    %c0_22 = arith.constant 0 : index
    %22 = vector.load %arg10[%c0_21, %c0_22] : memref<8x128xf32, #tpu.memory_space<vmem>>, vector<8x128xf32>
    tpu.vector_store %arg10[%c0_21, %c0_22], %21 {strides = array<i32>} : memref<8x128xf32, #tpu.memory_space<vmem>>, vector<8x128xf32>,
    return
  }
  func.func @transform_0(%arg0: i32) -> (i32, i32) {
    %c0_i32 = arith.constant 0 : i32
    %c0_i32_0 = arith.constant 0 : i32
    return %arg0, %c0_i32 : i32, i32
  }
  func.func @transform_1(%arg0: i32) -> (i32, i32) {
    %c0_i32 = arith.constant 0 : i32
    %c0_i32_0 = arith.constant 0 : i32
    return %arg0, %c0_i32 : i32, i32
  }
  func.func @transform_2(%arg0: i32) -> (i32, i32) {
    %c0_i32 = arith.constant 0 : i32
    %c0_i32_0 = arith.constant 0 : i32
    return %arg0, %c0_i32 : i32, i32
  }
  func.func @transform_3(%arg0: i32) -> (i32, i32) {
    %c0_i32 = arith.constant 0 : i32
    %c0_i32_0 = arith.constant 0 : i32
    %c0_i32_1 = arith.constant 0 : i32
    return %c0_i32, %c0_i32_0 : i32, i32
  }
  func.func @transform_4(%arg0: i32) -> (i32, i32) {
    %c0_i32 = arith.constant 0 : i32
    %c0_i32_0 = arith.constant 0 : i32
    %c0_i32_1 = arith.constant 0 : i32
    return %c0_i32, %c0_i32_0 : i32, i32
  }
  func.func @transform_5(%arg0: i32) -> (i32, i32) {
    %c0_i32 = arith.constant 0 : i32
    %c0_i32_0 = arith.constant 0 : i32
    %c0_i32_1 = arith.constant 0 : i32
    return %c0_i32, %c0_i32_0 : i32, i32
  }
  func.func @transform_6(%arg0: i32) -> (i32, i32) {
    %c0_i32 = arith.constant 0 : i32
    %c0_i32_0 = arith.constant 0 : i32
    %c0_i32_1 = arith.constant 0 : i32
    return %c0_i32, %c0_i32_0 : i32, i32
  }
  func.func @transform_7(%arg0: i32) -> (i32, i32) {
    %c0_i32 = arith.constant 0 : i32
    %c0_i32_0 = arith.constant 0 : i32
    %c0_i32_1 = arith.constant 0 : i32
    return %c0_i32, %c0_i32_0 : i32, i32
  }
  func.func @transform_8(%arg0: i32) -> (i32, i32) {
    %c0_i32 = arith.constant 0 : i32
    %c0_i32_0 = arith.constant 0 : i32
    %c0_i32_1 = arith.constant 0 : i32
    return %c0_i32, %c0_i32_0 : i32, i32
  }
  func.func @transform_9(%arg0: i32) -> (i32, i32) {
    %c0_i32 = arith.constant 0 : i32
    %c0_i32_0 = arith.constant 0 : i32
    return %arg0, %c0_i32 : i32, i32
  }
}

</mosaic_0001>

<bundles_post_ra>
// kernel: tpu_custom_call.1
= control target key start
LH: loop header
LB: loop body
LE: loop exit
PB: predicated region body
PF: predicated region fallthrough
CT: control target
= control target key end

     0   :  { %14 = vsyncpa [#allocation3], 0  ;;  %s736_s0 = inlined_call_operand.hbm [shape: bf16[8,32], index: 0, kind: input, shape index: {}]   ;;  %s737_s1 = inlined_call_operand.hbm [shape: bf16[8,32], index: 1, kind: input, shape index: {}]   ;;  %s738_s2 = inlined_call_operand.hbm [shape: bf16[8,32], index: 2, kind: input, shape index: {}]   ;;  %s739_s3 = inlined_call_operand.hbm [shape: bf16[32,128], index: 3, kind: input, shape index: {}]   ;;  %s740_s4 = inlined_call_operand.hbm [shape: bf16[32,128], index: 4, kind: input, shape index: {}]   ;;  %s741_s5 = inlined_call_operand.hbm [shape: bf16[32,128], index: 5, kind: input, shape index: {}]   ;;  %s742_s6 = inlined_call_operand.vmem [shape: f32[1,128], index: 6, kind: input, shape index: {}]   ;;  %s743_s7 = inlined_call_operand.hbm [shape: bf16[128,128], index: 7, kind: input, shape index: {}]   ;;  %s744_s8 = inlined_call_operand.vmem [shape: f32[1,128], index: 8, kind: input, shape index: {}]   ;;  %s745_s9 = inlined_call_operand.hbm [shape: f32[8,128], index: 9, kind: output, shape index: {}]  }
   0x1   :  { %15 = vsyncpa [#allocation6], 0 }
   0x2   :  { %16 = vsyncpa [#allocation9], 0 }
   0x3   :  { %17 = vsyncpa [#allocation12], 0  ;;  %s35_s11 = sshll.u32 %s737_s1, 4  ;;  %s36_s11 = int_to_ptr.hbm [resolvable:$true] %s35_s11 }
   0x4   :  { %18 = vsyncpa [#allocation4], 0  ;;  %s634_s12 = smov [#allocation5]   ;;  %s56_s16 = sshll.u32 %s739_s3, 4  ;;  %s57_s16 = int_to_ptr.hbm [resolvable:$true] %s56_s16 }
   0x5   :  { %s37_s13 = sshll.u32 %s634_s12, 4  ;;  %s635_s17 = smov [#allocation8]   ;;  %s38_s13 = int_to_ptr.vmem [resolvable:$true] %s37_s13 }
   0x6   :  { %40 = dma.hbm_to_vmem [thread:$0]  %s36_s11, 64, %s38_s13, [#allocation6]  }
   0x7   :  { %s58_s18 = sshll.u32 %s635_s17, 4  ;;  %s636_s19 = smov 64   ;;  %s59_s18 = int_to_ptr.vmem [resolvable:$true] %s58_s18 }
   0x8   :  { %s637_s20 = smov 4   ;;  %s82_s22 = sshll.u32 %s741_s5, 4  ;;  %s83_s22 = int_to_ptr.hbm [resolvable:$true] %s82_s22 }
   0x9   :  { %64 = dma.hbm_to_vmem [thread:$0]  %s57_s16, 256, %s59_s18, [#allocation9], %s636_s19, %s636_s19, %s637_s20  }
   0xa   :  { %s638_s23 = smov [#allocation11]   ;;  %s24_s26 = sshll.u32 %s736_s0, 4  ;;  %s25_s26 = int_to_ptr.hbm [resolvable:$true] %s24_s26 }
   0xb   :  { %s84_s24 = sshll.u32 %s638_s23, 4  ;;  %s639_s27 = smov [#allocation2]   ;;  %s85_s24 = int_to_ptr.vmem [resolvable:$true] %s84_s24 }
   0xc   :  { %90 = dma.hbm_to_vmem [thread:$0]  %s83_s22, 256, %s85_s24, [#allocation12], %s636_s19, %s636_s19, %s637_s20  }
   0xd   :  { %s26_s28 = sshll.u32 %s639_s27, 4  ;;  %s46_s10 = sshll.u32 %s738_s2, 4  ;;  %s27_s28 = int_to_ptr.vmem [resolvable:$true] %s26_s28  ;;  %s47_s10 = int_to_ptr.hbm [resolvable:$true] %s46_s10 }
   0xe   :  { %29 = dma.hbm_to_vmem [thread:$0]  %s25_s26, 64, %s27_s28, [#allocation3]  }
   0xf   :  { %s69_s12 = sshll.u32 %s740_s4, 4  ;;  %s640_s13 = smov [#allocation7]   ;;  %s70_s12 = int_to_ptr.hbm [resolvable:$true] %s69_s12 }
  0x10   :  { %s48_s0 = sshll.u32 %s640_s13, 4  ;;  %s641_s14 = smov [#allocation10]   ;;  %s49_s0 = int_to_ptr.vmem [resolvable:$true] %s48_s0 }
  0x11   :  { %51 = dma.hbm_to_vmem [thread:$0]  %s47_s10, 64, %s49_s0, [#allocation6]  }
  0x12   :  { %s71_s15 = sshll.u32 %s641_s14, 4  ;;  %s97_s18 = sshll.u32 %s743_s7, 4  ;;  %s72_s15 = int_to_ptr.vmem [resolvable:$true] %s71_s15  ;;  %s98_s18 = int_to_ptr.hbm [resolvable:$true] %s97_s18 }
  0x13   :  { %77 = dma.hbm_to_vmem [thread:$0]  %s70_s12, 256, %s72_s15, [#allocation9], %s636_s19, %s636_s19, %s637_s20  }
  0x14   :  { %s642_s2 = smov [#allocation13]  }
  0x15   :  { %s99_s1 = sshll.u32 %s642_s2, 4  ;;  %s100_s1 = int_to_ptr.vmem [resolvable:$true] %s99_s1 }
  0x16   :  { %105 = dma.hbm_to_vmem [thread:$0]  %s98_s18, 1024, %s100_s1, [#allocation12], %s636_s19, %s636_s19, %s637_s20  }
  0x17   :  { %624 = dma.done.wait [#allocation3], 64  }
  0x18   :  { %625 = vsyncadd [#allocation3], 4294967232 }
  0x19   :  { %626 = dma.done.wait [#allocation6], 128  }
  0x1a   :  { %627 = vsyncadd [#allocation6], 4294967168 }
  0x1b   :  { %628 = dma.done.wait [#allocation9], 512  }
  0x1c   :  { %629 = vsyncadd [#allocation9], 4294966784 }
  0x1d   :  { %630 = dma.done.wait [#allocation12], 1280  }
  0x1e   :  { %631 = vsyncadd [#allocation12], 4294966016  ;;  %v409_v0 = vld [vmem:[#allocation10 + $0x8] sm:$0xff]  ;;  %v407_v1 = vld [vmem:[#allocation8 + $0x8] sm:$0xff]  ;;  %vm159_vm0 = vcmask 261120   ;;  %s643_s21 = smov [#allocation14]  }
  0x1f   :  { %v411_v2 = vld [vmem:[#allocation11 + $0x8] sm:$0xff]  ;;  %169 = vmatpush.bf16.msra.mxu0 %v409_v0  ;;  %197 = vmatpush.bf16.msra.mxu1 %v407_v1  ;;  %v408_v3 = vld [vmem:[#allocation10] sm:$0xff]  ;;  %v406_v4 = vld [vmem:[#allocation8] sm:$0xff]  ;;  %s332_s22 = sshll.u32 %s643_s21, 4  ;;  %s334_s3 = sshll.u32 %s745_s9, 4  ;;  %s333_s22 = int_to_ptr.vmem [resolvable:$true] %s332_s22  ;;  %s335_s3 = int_to_ptr.hbm [resolvable:$true] %s334_s3 }
  0x20   :  { %230 = vmatpush.bf16.msra.mxu2 %v411_v2  ;;  %v410_v5 = vld [vmem:[#allocation11] sm:$0xff]  ;;  %v419_v6 = vld [vmem:[#allocation13 + $0x38] sm:$0xff]  ;;  %v142_v7 = vld [vmem:[#allocation5] sm:$0xf] }
  0x21   :  { %313 = vmatpush.bf16.msra.mxu3 %v419_v6  ;;  %v137_v8 = vld [vmem:[#allocation2] sm:$0xf]  ;;  %v418_v9 = vld [vmem:[#allocation13 + $0x30] sm:$0xff]  ;;  %v204_v10 = vld [vmem:[#allocation7] sm:$0xf] }
  0x22   :  { %v417_v11 = vld [vmem:[#allocation13 + $0x28] sm:$0xff]  ;;  %v416_v12 = vld [vmem:[#allocation13 + $0x20] sm:$0xff]  ;;  %v415_v13 = vld [vmem:[#allocation13 + $0x18] sm:$0xff] }
  0x23   :  { %170 = vmatpush.bf16.msra.mxu0 %v408_v3  ;;  %198 = vmatpush.bf16.msra.mxu1 %v406_v4  ;;  %v414_v14 = vld [vmem:[#allocation13 + $0x10] sm:$0xff]  ;;  %v413_v15 = vld [vmem:[#allocation13 + $0x8] sm:$0xff]  ;;  %v412_v16 = vld [vmem:[#allocation13] sm:$0xff] }
  0x24   :  { %231 = vmatpush.bf16.msra.mxu2 %v410_v5  ;;  %v430_v20 = vld [vmem:[%s742_s6] ss:$0 sm:$0xff] }
  0x25   :  { %314 = vmatpush.bf16.msra.mxu3 %v418_v9  ;;  %v431_v29 = vld [vmem:[%s744_s8] ss:$0 sm:$0xff] }
  0x26   :  { %355 = vmatmul.msk.bf16.vlgmr.msra.gmra.mxu0 %vm159_vm0, %v142_v7  ;;  %364 = vmatmul.msk.bf16.vlgmr.msra.gmra.mxu1 %vm159_vm0, %v137_v8 }
  0x27   :  { %373 = vmatmul.msk.bf16.vlgmr.msra.gmra.mxu2 %vm159_vm0, %v204_v10 }
  0x29   :  { %315 = vmatpush.bf16.msra.mxu3 %v417_v11 }
  0x2d   :  { %316 = vmatpush.bf16.msra.mxu3 %v416_v12 }
  0x31   :  { %317 = vmatpush.bf16.msra.mxu3 %v415_v13 }
  0x35   :  { %318 = vmatpush.bf16.msra.mxu3 %v414_v14 }
  0x39   :  { %319 = vmatpush.bf16.msra.mxu3 %v413_v15 }
  0x3d   :  { %320 = vmatpush.bf16.msra.mxu3 %v412_v16 }
  0xa3   :  { %v172_v17 = vpop.f32.mrf.mxu0  ;;  %v200_v18 = vpop.f32.mrf.mxu1 }
  0xa4   :  { %v201_v19 = vadd.f32 %v200_v18, %v172_v17 }
  0xaa   :  { %v233_v21 = vpop.f32.mrf.mxu2 }
  0xab   :  { %v237_v22 = vadd.f32 %v233_v21, %v201_v19  ;;  %v174_v23 = vpop.f32.mrf.mxu0  ;;  %v202_v24 = vpop.f32.mrf.mxu1 }
  0xad   :  { %v242_v25 = vadd.f32 %v430_v20, %v237_v22 }
  0xaf   :  { %v243_v26 = vmax.f32 %v242_v25, 0.0 }
  0xb1   :  { %v244_v27 = vpack.c.bf16 %v243_v26, %v243_v26 }
  0xb2   :  { %v235_v28 = vpop.f32.mrf.mxu2 }
  0xb3   :  { %321 = vmatmul.bf16.vlgmr.msra.gmra.mxu3 %v244_v27 }
 0x136   :  { %v322_v30 = vpop.f32.mrf.mxu3 }
 0x137   :  { %v323_v31 = vadd.f32 %v431_v29, %v322_v30 }
 0x139   :  { %326 = vst [vmem:[#allocation14] sm:$0xff] %v323_v31 }
 0x13a   :  { %337 = dma.vmem_to_hbm [thread:$0]  %s333_s22, 128, %s335_s3, [#allocation4]  }
 0x13e   :  { %v324_v32 = vpop.f32.mrf.mxu3 }
 0x13f   :  { %632 = dma.done.wait [#allocation4], 128  }
 0x140   :  { %633 = vsyncadd [#allocation4], 4294967168 }
 0x141   :  { %342 = vsyncpa [#allocation3], 1 }
 0x142   :  { %343 = vsyncpa [#allocation6], 1 }
 0x143   :  { %344 = vsyncpa [#allocation9], 1 }
 0x144   :  { %345 = vsyncpa [#allocation12], 1 }
 0x145   :  { %346 = vsyncpa [#allocation4], 1 }

</bundles_post_ra>
